<compile_context>
chip_gen: v7x
topology: tpu7x:2x2x1
jax: 0.10.0
libtpu: 0.0.40
codegen_flags: <defaults>
</compile_context>

<pallas_src>
import jax
import jax.numpy as jnp
from jax.experimental import pallas as pl
from jax.experimental.pallas import tpu as pltpu

_ROW_TILE_MAX = 1024


def _vmem_capacity_bytes():
    """Physical VMEM of the current part; conservative fallback if unqueryable."""
    try:
        return int(pltpu.get_tpu_info().vmem_capacity_bytes)
    except Exception:
        return 64 * 1024 * 1024   # v7x-sized fallback is safe everywhere


def _round_up(v, m):
    return ((v + m - 1) // m) * m


def _choose_tiles(R, H, F, x_dtype, w_dtype):
    """Pick (row_tile, ffn_tile) from the generation-aware VMEM budget."""
    x_item = jnp.dtype(x_dtype).itemsize
    w_item = jnp.dtype(w_dtype).itemsize
    sub = {1: 32, 2: 16}.get(x_item, 8)            # sublane multiple per dtype

    vmem_cap = _vmem_capacity_bytes()
    budget = int(vmem_cap * 0.70)                  # leave compiler/scratch headroom

    # ffn-dim tile: prefer 512, then 256 (keeps the 256-wide MXU full on v6e/v7x),
    # must divide F (no partial block on the reduction axis); fall back to full F.
    tf_cands = [c for c in (512, 256, 128) if c <= F and F % c == 0]
    if not tf_cands:
        tf = F
    else:
        tf = tf_cands[-1]
        for c in tf_cands:                         # biggest first
            # double-buffered fused gate/up (H, 2*tf) + down (tf, H) blocks
            if 2 * w_item * 3 * H * c <= budget // 2:
                tf = c
                break

    # Row tile: x/out double-buffered + f32 accumulator + f32 gu/gate/up/h temps.
    w_bytes = 2 * w_item * 3 * H * tf
    per_row = 2 * 2 * x_item * H + 4 * H + 28 * tf
    avail = budget - w_bytes
    if avail <= 0:
        tm = sub
    else:
        tm = max(sub, min(_ROW_TILE_MAX, (avail // per_row) // sub * sub))

    # Small-VMEM parts (v7x) have 2 TensorCores: keep >= 2 row tiles so the
    # "parallel" row axis shards across both cores.  On 128 MiB parts keep tm
    # as large as possible (weights are re-streamed per row tile).
    two_core_part = vmem_cap < 100 * 1024 * 1024
    if R <= tm:
        if two_core_part and R >= 2 * sub:
            tm = _round_up(pl.cdiv(R, 2), sub)
        else:
            tm = R                                  # single full-extent row block
    return int(tm), int(tf), vmem_cap


def _swiglu_ffn_kernel_acc(x_ref, wgu_ref, wd_ref, o_ref, acc_ref):
    # x_ref: (tm, H)   wgu_ref: (H, 2*tf)   wd_ref: (tf, H)
    # o_ref: (tm, H)   acc_ref: (tm, H) f32 scratch, resident across the ffn axis.
    tf = wd_ref.shape[0]

    @pl.when(pl.program_id(1) == 0)
    def _init():
        acc_ref[...] = jnp.zeros_like(acc_ref)

    gu = jnp.dot(x_ref[...], wgu_ref[...], preferred_element_type=jnp.float32)
    gate = gu[:, :tf]
    up = gu[:, tf:]
    # SiLU(gate) * up in f32; exp and reciprocal both on the EUP slot.
    h = gate * pl.reciprocal(1.0 + jnp.exp(-gate), approx=True) * up
    acc_ref[...] += jnp.dot(h.astype(wd_ref.dtype), wd_ref[...],
                            preferred_element_type=jnp.float32)

    @pl.when(pl.program_id(1) == pl.num_programs(1) - 1)
    def _finish():
        o_ref[...] = acc_ref[...].astype(o_ref.dtype)


def _swiglu_ffn_kernel_single(x_ref, wgu_ref, wd_ref, o_ref):
    # Single ffn step (tf == F): no accumulator round-trip, write o_ref directly.
    tf = wd_ref.shape[0]
    gu = jnp.dot(x_ref[...], wgu_ref[...], preferred_element_type=jnp.float32)
    gate = gu[:, :tf]
    up = gu[:, tf:]
    h = gate * pl.reciprocal(1.0 + jnp.exp(-gate), approx=True) * up
    o_ref[...] = jnp.dot(h.astype(wd_ref.dtype), wd_ref[...],
                         preferred_element_type=jnp.float32).astype(o_ref.dtype)


def ffn(x, w_gate, w_up, w_down, *, tile_rows=None, tile_ff=None):
    """x: (..., H); w_gate/w_up: (H, F); w_down: (F, H) with F = 2*H.

    NOTE: feed bf16 activations/weights in the real model path (f32 inputs force
    the slow multi-pass MXU mode); accumulation is always f32.
    """
    orig_shape = x.shape
    H = orig_shape[-1]
    F = w_gate.shape[-1]
    assert w_gate.shape == (H, F) and w_up.shape == (H, F) and w_down.shape == (F, H)
    x2d = x.reshape(-1, H)
    R = x2d.shape[0]

    tm_auto, tf_auto, vmem_cap = _choose_tiles(R, H, F, x.dtype, w_gate.dtype)
    tm = tile_rows if tile_rows is not None else tm_auto
    tf = tile_ff if tile_ff is not None else tf_auto
    # Reduction (ffn) axis must never have a partial block: padded weight / h
    # garbage would otherwise be accumulated.  Only the row axis may be partial.
    if F % tf != 0:
        raise ValueError(f"tile_ff={tf} must divide the ffn dim F={F}")
    n_ff = F // tf

    # Fuse gate & up weights at ffn-tile granularity: block f (width 2*tf) holds
    # [ W_gate[:, f*tf:(f+1)*tf] | W_up[:, f*tf:(f+1)*tf] ].
    wgu = jnp.stack(
        [w_gate.reshape(H, n_ff, tf), w_up.reshape(H, n_ff, tf)], axis=2
    ).reshape(H, 2 * F)

    # Extra weight buffering only on big-VMEM (128 MiB) parts for decode-like
    # (small tm, weight-DMA-bound) shapes; skip on v7x where VMEM is scarce.
    w_item = jnp.dtype(w_gate.dtype).itemsize
    wbuf = 2
    if (vmem_cap >= 100 * 1024 * 1024 and tm <= 128
            and 3 * w_item * 3 * H * tf <= int(vmem_cap * 0.70) // 2):
        wbuf = 3
    w_kwargs = {"pipeline_mode": pl.Buffered(wbuf)} if wbuf > 2 else {}

    if n_ff == 1:
        kernel = _swiglu_ffn_kernel_single
        scratch_shapes = []
    else:
        kernel = _swiglu_ffn_kernel_acc
        scratch_shapes = [pltpu.VMEM((tm, H), jnp.float32)]

    grid = (pl.cdiv(R, tm), n_ff)
    vmem_limit = int(vmem_cap * 13 // 16)   # ~104 MiB on 128 MiB parts, ~52 MiB on v7x

    out = pl.pallas_call(
        kernel,
        out_shape=jax.ShapeDtypeStruct((R, H), x.dtype),
        grid_spec=pltpu.PrefetchScalarGridSpec(
            num_scalar_prefetch=0,
            grid=grid,
            in_specs=[
                pl.BlockSpec((tm, H), lambda i, f: (i, 0)),              # x tile (resident over f)
                pl.BlockSpec((H, 2 * tf), lambda i, f: (0, f), **w_kwargs),  # fused gate|up block
                pl.BlockSpec((tf, H), lambda i, f: (f, 0), **w_kwargs),      # W_down row block
            ],
            out_specs=pl.BlockSpec((tm, H), lambda i, f: (i, 0)),
            scratch_shapes=scratch_shapes,
        ),
        compiler_params=pltpu.CompilerParams(
            dimension_semantics=("parallel", "arbitrary"),
            vmem_limit_bytes=vmem_limit,
        ),
    )(x2d, wgu, w_down)

    # Dropout (p=0.1) is identity in eval/inference mode; see TODO at top.
    return out.reshape(orig_shape)


def ffn_reference(x, w_gate, w_up, w_down):
    xf = x.astype(jnp.float32)
    g = xf @ w_gate.astype(jnp.float32)
    u = xf @ w_up.astype(jnp.float32)
    h = g * jax.nn.sigmoid(g) * u
    return (h @ w_down.astype(jnp.float32)).astype(x.dtype)


if __name__ == "__main__":
    # Small shapes consistent with FFN.forward: (batch, seq, hidden), ffn_dim = 2*hidden.
    batch, seq, hidden = 2, 8, 128
    ffn_dim = 2 * hidden

    key = jax.random.PRNGKey(0)
    kx, kg, ku, kd = jax.random.split(key, 4)
    x = jax.random.normal(kx, (batch, seq, hidden), dtype=jnp.float32)
    w_gate = 0.02 * jax.random.normal(kg, (hidden, ffn_dim), dtype=jnp.float32)
    w_up = 0.02 * jax.random.normal(ku, (hidden, ffn_dim), dtype=jnp.float32)
    w_down = 0.02 * jax.random.normal(kd, (ffn_dim, hidden), dtype=jnp.float32)

    y_ref = ffn_reference(x, w_gate, w_up, w_down).astype(jnp.float32)

    # f32 correctness (single-ffn-step path).
    y = jax.block_until_ready(ffn(x, w_gate, w_up, w_down))
    assert y.shape == x.shape and y.dtype == x.dtype
    err = float(jnp.max(jnp.abs(y.astype(jnp.float32) - y_ref)))
    assert err < 1e-3, f"f32 max err {err}"

    # Multi-step reduction path (exercises the f32 accumulator kernel).
    y2 = jax.block_until_ready(ffn(x, w_gate, w_up, w_down, tile_ff=128))
    err2 = float(jnp.max(jnp.abs(y2.astype(jnp.float32) - y_ref)))
    assert err2 < 1e-3, f"multi-step max err {err2}"

    # bf16 path (the real-model dtype: native single-pass MXU mode, f32 accumulate).
    xb, wgb, wub, wdb = (a.astype(jnp.bfloat16) for a in (x, w_gate, w_up, w_down))
    yb = jax.block_until_ready(ffn(xb, wgb, wub, wdb))
    assert yb.shape == x.shape and yb.dtype == jnp.bfloat16
    errb = float(jnp.max(jnp.abs(yb.astype(jnp.float32) - y_ref)))
    assert errb < 5e-3, f"bf16 max err {errb}"

    print("KERNEL_OK")
</pallas_src>

<mosaic_0001>
module attributes {stable_mosaic.version = 11 : i64} {
  func.func @_swiglu_ffn_kernel_single(%arg0: i32, %arg1: i32, %arg2: memref<8x128xf32, #tpu.memory_space<vmem>>, %arg3: memref<128x512xf32, #tpu.memory_space<vmem>>, %arg4: memref<256x128xf32, #tpu.memory_space<vmem>>, %arg5: memref<8x128xf32, #tpu.memory_space<vmem>>) attributes {dimension_semantics = [#tpu.dimension_semantics<parallel>, #tpu.dimension_semantics<arbitrary>], iteration_bounds = array<i64: 2, 1>, scalar_prefetch = 0 : i64, scratch_operands = 0 : i64, tpu.core_type = #tpu.core_type<tc>, window_params = [{transform_indices = @transform_0, window_bounds = array<i64: 8, 128>}, {transform_indices = @transform_1, window_bounds = array<i64: 128, 512>}, {transform_indices = @transform_2, window_bounds = array<i64: 256, 128>}, {transform_indices = @transform_3, window_bounds = array<i64: 8, 128>}]} {
    %c0 = arith.constant 0 : index
    %c0_0 = arith.constant 0 : index
    %0 = vector.load %arg2[%c0, %c0_0] : memref<8x128xf32, #tpu.memory_space<vmem>>, vector<8x128xf32>
    %c0_1 = arith.constant 0 : index
    %c0_2 = arith.constant 0 : index
    %1 = vector.load %arg3[%c0_1, %c0_2] : memref<128x512xf32, #tpu.memory_space<vmem>>, vector<128x512xf32>
    %cst = arith.constant dense<0.000000e+00> : vector<8x512xf32>
    %2 = tpu.matmul %0, %1, %cst {dimension_numbers = #tpu.dot_dimension_numbers<[1], [0], [0], [1], [0, 0, 1, 1], [], []>} : vector<8x128xf32>, vector<128x512xf32>, vector<8x512xf32> -> vector<8x512xf32>
    %3 = vector.extract_strided_slice %2 {offsets = [0, 0], sizes = [8, 256], strides = [1, 1]} : vector<8x512xf32> to vector<8x256xf32>
    %4 = vector.extract_strided_slice %2 {offsets = [0, 256], sizes = [8, 256], strides = [1, 1]} : vector<8x512xf32> to vector<8x256xf32>
    %cst_3 = arith.constant 0.000000e+00 : f32
    %5 = vector.broadcast %cst_3 : f32 to vector<8x256xf32>
    %6 = arith.subf %5, %3 : vector<8x256xf32>
    %7 = math.exp %6 : vector<8x256xf32>
    %cst_4 = arith.constant 1.000000e+00 : f32
    %8 = vector.broadcast %cst_4 : f32 to vector<8x256xf32>
    %9 = arith.addf %8, %7 : vector<8x256xf32>
    %10 = tpu.reciprocal %9 {approx = true} : vector<8x256xf32> -> vector<8x256xf32>
    %11 = arith.mulf %3, %10 : vector<8x256xf32>
    %12 = arith.mulf %11, %4 : vector<8x256xf32>
    %c0_5 = arith.constant 0 : index
    %c0_6 = arith.constant 0 : index
    %13 = vector.load %arg4[%c0_5, %c0_6] : memref<256x128xf32, #tpu.memory_space<vmem>>, vector<256x128xf32>
    %cst_7 = arith.constant dense<0.000000e+00> : vector<8x128xf32>
    %14 = tpu.matmul %12, %13, %cst_7 {dimension_numbers = #tpu.dot_dimension_numbers<[1], [0], [0], [1], [0, 0, 1, 1], [], []>} : vector<8x256xf32>, vector<256x128xf32>, vector<8x128xf32> -> vector<8x128xf32>
    %c0_8 = arith.constant 0 : index
    %c0_9 = arith.constant 0 : index
    %15 = vector.load %arg5[%c0_8, %c0_9] : memref<8x128xf32, #tpu.memory_space<vmem>>, vector<8x128xf32>
    tpu.vector_store %arg5[%c0_8, %c0_9], %14 {strides = array<i32>} : memref<8x128xf32, #tpu.memory_space<vmem>>, vector<8x128xf32>,
    return
  }
  func.func @transform_0(%arg0: i32, %arg1: i32) -> (i32, i32) {
    %c0_i32 = arith.constant 0 : i32
    %c0_i32_0 = arith.constant 0 : i32
    return %arg0, %c0_i32 : i32, i32
  }
  func.func @transform_1(%arg0: i32, %arg1: i32) -> (i32, i32) {
    %c0_i32 = arith.constant 0 : i32
    %c0_i32_0 = arith.constant 0 : i32
    return %c0_i32, %arg1 : i32, i32
  }
  func.func @transform_2(%arg0: i32, %arg1: i32) -> (i32, i32) {
    %c0_i32 = arith.constant 0 : i32
    %c0_i32_0 = arith.constant 0 : i32
    return %arg1, %c0_i32 : i32, i32
  }
  func.func @transform_3(%arg0: i32, %arg1: i32) -> (i32, i32) {
    %c0_i32 = arith.constant 0 : i32
    %c0_i32_0 = arith.constant 0 : i32
    return %arg0, %c0_i32 : i32, i32
  }
}

</mosaic_0001>

<bundles_post_ra>
// kernel: tpu_custom_call.1
= control target key start
LH: loop header
LB: loop body
LE: loop exit
PB: predicated region body
PF: predicated region fallthrough
CT: control target
= control target key end

     0   :  { %8 = vsyncpa [#allocation3], 0  ;;  %s1388_s0 = inlined_call_operand.hbm [shape: f32[16,128], index: 0, kind: input, shape index: {}]   ;;  %s1389_s1 = inlined_call_operand.hbm [shape: f32[128,512], index: 1, kind: input, shape index: {}]   ;;  %s1390_s2 = inlined_call_operand.hbm [shape: f32[256,128], index: 2, kind: input, shape index: {}]   ;;  %s1391_s3 = inlined_call_operand.hbm [shape: f32[16,128], index: 3, kind: output, shape index: {}]  }
   0x1   :  { %10 = vsyncpa [#allocation3 + $0x1], 0 }
   0x2   :  { %11 = vsyncpa [#allocation6], 0 }
   0x3   :  { %12 = vsyncpa [#allocation4], 0 }
   0x4   :  { %14 = vsyncpa [#allocation4 + $0x1], 0  ;;  %s1131_s12 = smov 0   ;;  %s1133_s13 = smov 0  }
   0x5   :  { %s1135_s14 = smov 0   ;;  %s1137_s15 = smov 0  }
   0x6   :  { %s1139_s16 = smov 0   ;;  %s1141_s17 = smov 0  }
   0x7 LB: > { %s684_s18 = sadd.s32 4294967295, %s1100_s17   ;;  %s685_s19 = sadd.s32 4294967294, %s1100_s17   ;;  %s1100_s17 = sphi %s1141_s17, %s20_s17   ;;  %s1096_s16 = sphi %s1139_s16, %s1413_s16   ;;  %s1092_s15 = sphi %s1137_s15, %s1412_s15   ;;  %s1088_s14 = sphi %s1135_s14, %s1411_s14   ;;  %s1084_s13 = sphi %s1133_s13, %s1410_s13   ;;  %s1080_s12 = sphi %s1131_s12, %s1409_s12  }
   0x8   : > { %p52_p0 = scmp.ne.s32.totalorder %s1084_s13, %s1080_s12  ;;  %p1165_p1 = scmp.eq.s32.totalorder %s684_s18, 0 }
   0x9   : > { %p1169_p2 = scmp.eq.s32.totalorder %s684_s18, 1  ;;  %p134_p3 = scmp.eq.s32.totalorder %s685_s19, 1 }
   0xa   : > { %s1396_s20 = scalar_select %p1165_p1, 1, 0 }
   0xb   : > { %p1175_p4 = por %p1165_p1, %p52_p0  ;;  %p686_p5 = scmp.ge.s32.totalorder %s1100_s17, 1 }
   0xc   : > { %p1180_p6 = por %p134_p3, %p52_p0  ;;  %p141_p7 = scmp.lt.s32.totalorder %s1100_s17, 3 }
   0xd   : > { %s1398_s22 = scalar_select %p1175_p4, 1, 0 }
   0xe   : > { %s1399_s23 = scalar_select %p1180_p6, 1, 0 }
   0xf   : > { %p1185_p8 = pnand %p686_p5, %p141_p7  ;;  %s1102_s25 = smov [#allocation5]  }
  0x10   : > { %s156_s26 = sshll.u32 %s1102_s25, 4  ;;  %s1103_s28 = smov [#allocation7]   ;;  %s1189_s26 = int_to_ptr.vmem [resolvable:$true] %s156_s26 }
  0x11   : > { %p844_p9 = pneg %p1185_p8  ;;  %s172_s29 = sshll.u32 %s1103_s28, 4  ;;  %s1200_s29 = int_to_ptr.vmem [resolvable:$true] %s172_s29 }
  0x12   : > { %s928_s5 = scalar_lea.hbm %s1389_s1, 8192 }
  0x13   : > { %p1196_p11 = pnand %p844_p9, %p1165_p1  ;;  %p929_p12 = scmp.ne.s32.totalorder %s1389_s1, %s928_s5 }
  0x14   : > { %p935_p5 = scmp.lt.u32.totalorder %s928_s5, %s1389_s1 }
  0x15   : > { %p930_p13 = pneg %p1196_p11 }
  0x17   : > { %p931_p0 = pnand %p930_p13, %p929_p12 }
  0x19   : > { %p932_p3 = pneg %p931_p0 }
  0x1b   : > { %p937_p7 = pnand %p935_p5, %p932_p3 }
  0x1d   : > { %940 = shalt.err (!%p937_p7)
}
  0x1e   : > { %s941_s10 = scalar_lea.vmem %s1189_s26, 8192  ;;  %p949_p1 = scmp.lt.s32.totalorder %s1189_s26, %s1189_s26 }
  0x1f   : > { %p942_p9 = scmp.ne.s32.totalorder %s1189_s26, %s941_s10  ;;  %p950_p12 = scmp.lt.s32.totalorder %s941_s10, %s941_s10 }
  0x21   : > { %p944_p10 = pnand %p942_p9, %p930_p13  ;;  %p951_p0 = por %p950_p12, %p949_p1 }
  0x23   : > { %p945_p6 = pneg %p944_p10 }
  0x25   : > { %p952_p4 = pnand %p951_p0, %p945_p6 }
  0x27   : > { %955 = shalt.err (!%p952_p4)
}
  0x28   : > { %s1104_s11 = smov 512   ;;  %s1105_s18 = smov 32  }
  0x29   : > { %847 = dma.hbm_to_vmem [thread:$0]  (!%p1196_p11), %s1389_s1, 8192, %s1189_s26, [#allocation6], %s1104_s11, %s1104_s11, %s1105_s18  }
  0x2a   : > { %s956_s4 = scalar_lea.hbm %s1390_s2, 4096 }
  0x2b   : > { %p957_p1 = scmp.ne.s32.totalorder %s1390_s2, %s956_s4  ;;  %p963_p10 = scmp.lt.u32.totalorder %s956_s4, %s1390_s2 }
  0x2d   : > { %p959_p4 = pnand %p957_p1, %p930_p13 }
  0x2f   : > { %p960_p6 = pneg %p959_p4 }
  0x31   : > { %p965_p3 = pnand %p963_p10, %p960_p6 }
  0x33   : > { %968 = shalt.err (!%p965_p3)
}
  0x34   : > { %s969_s26 = scalar_lea.vmem %s1200_s29, 4096  ;;  %p977_p12 = scmp.lt.s32.totalorder %s1200_s29, %s1200_s29 }
  0x35   : > { %p970_p5 = scmp.ne.s32.totalorder %s1200_s29, %s969_s26  ;;  %p978_p0 = scmp.lt.s32.totalorder %s969_s26, %s969_s26 }
  0x37   : > { %p972_p7 = pnand %p970_p5, %p930_p13  ;;  %p979_p1 = por %p978_p0, %p977_p12 }
  0x39   : > { %p973_p9 = pneg %p972_p7 }
  0x3b   : > { %p980_p4 = pnand %p979_p1, %p973_p9 }
  0x3d   : > { %983 = shalt.err (!%p980_p4)
}
  0x3e   : > { %s1106_s9 = smov 128   ;;  %s1107_s10 = smov 8  }
  0x3f   : > { %850 = dma.hbm_to_vmem [thread:$0]  (!%p1196_p11), %s1390_s2, 4096, %s1200_s29, [#allocation6], %s1106_s9, %s1106_s9, %s1107_s10  }
  0x40   : > { %s32_s19 = sadd.s32 1, %s1096_s16  ;;  %s39_s25 = sadd.s32 1, %s1088_s14 }
  0x41   : > { %p34_p13 = scmp.ge.s32.totalorder %s32_s19, 2  ;;  %p46_p6 = scmp.ne.s32.totalorder %s1088_s14, %s1084_s13 }
  0x42   : > { %p47_p10 = scmp.eq.s32.totalorder %s1100_s17, 0  ;;  %p861_p3 = scmp.lt.s32.totalorder %s1100_s17, 2 }
  0x43   : > { %s1415_s19 = smov (%p34_p13, %s32_s19), 0  ;;  %p1264_p7 = por %p1169_p2, %p46_p6 }
  0x44   : > { %p48_p5 = por %p47_p10, %p46_p6  ;;  %s36_s27 = ssub.s32 %s1096_s16, %s1415_s19 }
  0x45   : > { %s1402_s28 = scalar_select %p1264_p7, 1, 0 }
  0x46   : > { %s186_s30 = sand.u32 1, %s1088_s14   ;;  %p37_p9 = scmp.eq.s32.totalorder %s36_s27, 0 }
  0x47   : > { %s690_s29 = sshll.u32 %s186_s30, 3  ;;  %s691_s4 = sshll.u32 %s1096_s16, 7 }
  0x48   : > { %s1273_s5 = scalar_select %p37_p9, %s1088_s14, %s39_s25  }
  0x49   : > { %s1278_s8 = scalar_lea.hbm %s1388_s0, %s691_s4  ;;  %s190_s21 = scalar_lea.vmem [#allocation2], %s690_s29 }
  0x4a   : > { %s197_s26 = sshll.u32 %s190_s21, 4  ;;  %p1282_p2 = pnand %p861_p3, %p48_p5  ;;  %s1286_s26 = int_to_ptr.vmem [resolvable:$true] %s197_s26 }
  0x4b   : > { %s187_s10 = scalar_lea.sflag [#allocation3], %s186_s30  ;;  %s984_s11 = scalar_lea.hbm %s1278_s8, 128 }
  0x4c   : > { %p985_p11 = scmp.ne.s32.totalorder %s1278_s8, %s984_s11  ;;  %p986_p12 = pneg %p1282_p2 }
  0x4d   : > { %s989_s27 = scalar_lea.hbm %s1388_s0, 256  ;;  %p990_p4 = scmp.lt.u32.totalorder %s1278_s8, %s1388_s0 }
  0x4e   : > { %p987_p0 = pnand %p986_p12, %p985_p11  ;;  %p991_p13 = scmp.lt.u32.totalorder %s989_s27, %s984_s11 }
  0x4f   : > { %p993_p10 = scmp.lt.u32.totalorder %s984_s11, %s1278_s8 }
  0x50   : > { %p988_p1 = pneg %p987_p0  ;;  %p992_p6 = por %p991_p13, %p990_p4 }
  0x52   : > { %p994_p3 = por %p993_p10, %p992_p6 }
  0x54   : > { %p995_p5 = pnand %p994_p3, %p988_p1 }
  0x56   : > { %998 = shalt.err (!%p995_p5)
}
  0x57   : > { %s999_s30 = scalar_lea.vmem %s1286_s26, 128  ;;  %s1108_s6 = smov [#allocation2]  }
  0x58   : > { %p1000_p9 = scmp.ne.s32.totalorder %s1286_s26, %s999_s30  ;;  %s1004_s7 = sshll.u32 %s1108_s6, 4  ;;  %s1005_s7 = int_to_ptr.vmem [resolvable:$false] %s1004_s7 }
  0x59   : > { %s1006_s21 = scalar_lea.vmem %s1005_s7, 256  ;;  %p1007_p7 = scmp.lt.s32.totalorder %s1286_s26, %s1005_s7 }
  0x5a   : > { %p1002_p11 = pnand %p1000_p9, %p986_p12  ;;  %p1008_p4 = scmp.lt.s32.totalorder %s1006_s21, %s999_s30 }
  0x5c   : > { %p1003_p0 = pneg %p1002_p11  ;;  %p1009_p13 = por %p1008_p4, %p1007_p7 }
  0x5e   : > { %p1010_p6 = pnand %p1009_p13, %p1003_p0 }
  0x60   : > { %1013 = shalt.err (!%p1010_p6)
}
  0x61   : > { %854 = dma.hbm_to_vmem [thread:$0]  (!%p1282_p2), %s1278_s8, 128, %s1286_s26, %s187_s10  }
  0x62   : > { %206 = sbr.rel (%p1185_p8) target bundleno = 620 (0x26c), region = 32  ;;  %s1316_s11 = sand.u32 (!%p1185_p8), 1, %s1084_s13  }
  0x63   : > { %s693_s18 = sshll.u32 (!%p1185_p8), %s1316_s11, 3  ;;  %s209_s25 = scalar_lea.sflag (!%p1185_p8), [#allocation3], %s1316_s11 }
  0x64   : > { %s1322_s27 = scalar_lea.vmem (!%p1185_p8), [#allocation2], %s693_s18  ;;  %p1404_p7 = scmp.ne.s32.totalorder (!%p1185_p8), %s1398_s22, 0 }
  0x69   : > { %1067 = dma.done.wait (%p1404_p7), %s209_s25, 128  }
  0x6a   : > { %1069 = vsyncadd (%p1404_p7), %s209_s25, 4294967168  ;;  %p1405_p2 = scmp.ne.s32.totalorder %s1396_s20, 0 }
  0x6c   : > { %1071 = dma.done.wait (%p1405_p2), [#allocation6], 12288  }
  0x6d   : > { %1073 = vsyncadd (%p1405_p2), [#allocation6], 4294955008  ;;  %v1109_v0 = vmov 0.0   ;;  %v247_v1 = vld [vmem:[#allocation5 + $0x8] sm:$0xff]  ;;  %v246_v3 = vld [vmem:[#allocation5] sm:$0xff]  ;;  %s698_s20 = sshll.u32 %s1092_s15, 7 }
  0x6e   : > { %374 = vmatprep.mubr.f32.mxu0 %v1109_v0  ;;  %445 = vmatprep.mubr.f32.mxu1 %v1109_v0  ;;  %v251_v2 = vld [vmem:[#allocation5 + $0x28] sm:$0xff]  ;;  %v250_v5 = vld [vmem:[#allocation5 + $0x20] sm:$0xff]  ;;  %v249_v26 = vld [vmem:[#allocation5 + $0x18] sm:$0xff]  ;;  %s242_s22 = scalar_lea.vmem [#allocation8], %s693_s18  ;;  %s1339_s9 = scalar_lea.hbm %s1391_s3, %s698_s20 }
  0x6f   : > { %v736_v4 = vpack.c.bf16 %v251_v2, %v247_v1  ;;  %v255_v6 = vld [vmem:[#allocation5 + $0x48] sm:$0xff]  ;;  %v738_v8 = vpack.c.bf16 %v250_v5, %v246_v3  ;;  %v254_v10 = vld [vmem:[#allocation5 + $0x40] sm:$0xff]  ;;  %v253_v28 = vld [vmem:[#allocation5 + $0x38] sm:$0xff]  ;;  %s583_s24 = sshll.u32 %s242_s22, 4  ;;  %s570_s10 = scalar_lea.sflag [#allocation4], %s1316_s11  ;;  %s1341_s24 = int_to_ptr.vmem [resolvable:$true] %s583_s24 }
  0x70   : > { %v259_v7 = vld [vmem:[#allocation5 + $0x68] sm:$0xff]  ;;  %v258_v11 = vld [vmem:[#allocation5 + $0x60] sm:$0xff]  ;;  %v248_v29 = vld [vmem:[#allocation5 + $0x10] sm:$0xff]  ;;  %v768_v33 = vpack.c.bf16 %v253_v28, %v249_v26  ;;  %s1014_s29 = scalar_lea.vmem %s1341_s24, 128  ;;  %p1406_p12 = scmp.ne.s32.totalorder %s1402_s28, 0 }
  0x71   : > { %v740_v9 = vpack.c.bf16 %v259_v7, %v255_v6  ;;  %v263_v12 = vld [vmem:[#allocation5 + $0x88] sm:$0xff]  ;;  %737 = vmatprep.subr.bf16.mxu0 %v736_v4  ;;  %v742_v14 = vpack.c.bf16 %v258_v11, %v254_v10  ;;  %v262_v16 = vld [vmem:[#allocation5 + $0x80] sm:$0xff]  ;;  %v252_v30 = vld [vmem:[#allocation5 + $0x30] sm:$0xff]  ;;  %p1015_p8 = scmp.ne.s32.totalorder %s1341_s24, %s1014_s29  ;;  %s1110_s15 = smov [#allocation8]  }
  0x72   : > { %v267_v13 = vld [vmem:[#allocation5 + $0xa8] sm:$0xff]  ;;  %739 = vmatpush1.bf16.msra.mxu0 %v738_v8  ;;  %v266_v17 = vld [vmem:[#allocation5 + $0xa0] sm:$0xff]  ;;  %v770_v34 = vpack.c.bf16 %v252_v30, %v248_v29  ;;  %v257_v35 = vld [vmem:[#allocation5 + $0x58] sm:$0xff]  ;;  %769 = vmatprep.subr.bf16.mxu1 %v768_v33  ;;  %s1018_s4 = sshll.u32 %s1110_s15, 4  ;;  %s1019_s4 = int_to_ptr.vmem [resolvable:$false] %s1018_s4 }
  0x73   : > { %741 = vmatprep.subr.bf16.mxu0 %v740_v9  ;;  %v744_v15 = vpack.c.bf16 %v267_v13, %v263_v12  ;;  %v271_v18 = vld [vmem:[#allocation5 + $0xc8] sm:$0xff]  ;;  %v746_v20 = vpack.c.bf16 %v266_v17, %v262_v16  ;;  %v270_v22 = vld [vmem:[#allocation5 + $0xc0] sm:$0xff]  ;;  %v261_v36 = vld [vmem:[#allocation5 + $0x78] sm:$0xff]  ;;  %p1016_p1 = pnand %p1015_p8, %p1406_p12  ;;  %s1020_s30 = scalar_lea.vmem %s1019_s4, 256 }
  0x74   : > { %v275_v19 = vld [vmem:[#allocation5 + $0xe8] sm:$0xff]  ;;  %v274_v23 = vld [vmem:[#allocation5 + $0xe0] sm:$0xff]  ;;  %v772_v38 = vpack.c.bf16 %v261_v36, %v257_v35  ;;  %v256_v39 = vld [vmem:[#allocation5 + $0x50] sm:$0xff]  ;;  %771 = vmatpush1.bf16.msra.mxu1 %v770_v34  ;;  %p1021_p3 = scmp.lt.s32.totalorder %s1341_s24, %s1019_s4  ;;  %p1022_p5 = scmp.lt.s32.totalorder %s1020_s30, %s1014_s29 }
  0x75   : > { %v748_v21 = vpack.c.bf16 %v275_v19, %v271_v18  ;;  %v279_v24 = vld [vmem:[#allocation5 + $0x108] sm:$0xff]  ;;  %v278_v27 = vld [vmem:[#allocation5 + $0x100] sm:$0xff]  ;;  %v750_v31 = vpack.c.bf16 %v274_v23, %v270_v22  ;;  %v260_v40 = vld [vmem:[#allocation5 + $0x70] sm:$0xff]  ;;  %p1017_p10 = pneg %p1016_p1 }
  0x76   : > { %743 = vmatpush1.bf16.msra.mxu0 %v742_v14  ;;  %v283_v25 = vld [vmem:[#allocation5 + $0x128] sm:$0xff]  ;;  %v282_v32 = vld [vmem:[#allocation5 + $0x120] sm:$0xff]  ;;  %v265_v41 = vld [vmem:[#allocation5 + $0x98] sm:$0xff]  ;;  %v774_v45 = vpack.c.bf16 %v260_v40, %v256_v39  ;;  %773 = vmatprep.subr.bf16.mxu1 %v772_v38  ;;  %p1023_p9 = por %p1022_p5, %p1021_p3 }
  0x77   : > { %745 = vmatprep.subr.bf16.mxu0 %v744_v15  ;;  %v752_v37 = vpack.c.bf16 %v283_v25, %v279_v24  ;;  %v287_v42 = vld [vmem:[#allocation5 + $0x148] sm:$0xff]  ;;  %v269_v44 = vld [vmem:[#allocation5 + $0xb8] sm:$0xff]  ;;  %v754_v46 = vpack.c.bf16 %v282_v32, %v278_v27  ;;  %v286_v47 = vld [vmem:[#allocation5 + $0x140] sm:$0xff] }
  0x78   : > { %v291_v43 = vld [vmem:[#allocation5 + $0x168] sm:$0xff]  ;;  %v776_v48 = vpack.c.bf16 %v269_v44, %v265_v41  ;;  %v264_v49 = vld [vmem:[#allocation5 + $0x90] sm:$0xff]  ;;  %v290_v52 = vld [vmem:[#allocation5 + $0x160] sm:$0xff]  ;;  %775 = vmatpush1.bf16.msra.mxu1 %v774_v45  ;;  %p1024_p11 = pnand %p1023_p9, %p1017_p10 }
  0x79   : > { %v268_v50 = vld [vmem:[#allocation5 + $0xb0] sm:$0xff]  ;;  %v756_v51 = vpack.c.bf16 %v291_v43, %v287_v42  ;;  %v273_v53 = vld [vmem:[#allocation5 + $0xd8] sm:$0xff]  ;;  %v295_v55 = vld [vmem:[#allocation5 + $0x188] sm:$0xff]  ;;  %v758_v58 = vpack.c.bf16 %v290_v52, %v286_v47 }
  0x7a   : > { %747 = vmatpush1.bf16.msra.mxu0 %v746_v20  ;;  %v277_v54 = vld [vmem:[#allocation5 + $0xf8] sm:$0xff]  ;;  %v299_v56 = vld [vmem:[#allocation5 + $0x1a8] sm:$0xff]  ;;  %v778_v57 = vpack.c.bf16 %v268_v50, %v264_v49  ;;  %v294_v59 = vld [vmem:[#allocation5 + $0x180] sm:$0xff]  ;;  %777 = vmatprep.subr.bf16.mxu1 %v776_v48 }
  0x7b   : > { %749 = vmatprep.subr.bf16.mxu0 %v748_v21  ;;  %v780_v60 = vpack.c.bf16 %v277_v54, %v273_v53  ;;  %v272_v61 = vld [vmem:[#allocation5 + $0xd0] sm:$0xff]  ;;  %v760_v63 = vpack.c.bf16 %v299_v56, %v295_v55  ;;  %v298_v0 = vld [vmem:[#allocation5 + $0x1a0] sm:$0xff]  ;;  %v281_v1 = vld [vmem:[#allocation5 + $0x118] sm:$0xff] }
  0x7c   : > { %v276_v62 = vld [vmem:[#allocation5 + $0xf0] sm:$0xff]  ;;  %v285_v2 = vld [vmem:[#allocation5 + $0x138] sm:$0xff]  ;;  %v303_v3 = vld [vmem:[#allocation5 + $0x1c8] sm:$0xff]  ;;  %779 = vmatpush1.bf16.msra.mxu1 %v778_v57  ;;  %v762_v6 = vpack.c.bf16 %v298_v0, %v294_v59 }
  0x7d   : > { %v307_v4 = vld [vmem:[#allocation5 + $0x1e8] sm:$0xff]  ;;  %v782_v5 = vpack.c.bf16 %v276_v62, %v272_v61  ;;  %v302_v7 = vld [vmem:[#allocation5 + $0x1c0] sm:$0xff]  ;;  %781 = vmatprep.subr.bf16.mxu1 %v780_v60  ;;  %v784_v8 = vpack.c.bf16 %v285_v2, %v281_v1  ;;  %v280_v9 = vld [vmem:[#allocation5 + $0x110] sm:$0xff] }
  0x7e   : > { %751 = vmatpush1.bf16.msra.mxu0 %v750_v31  ;;  %v284_v10 = vld [vmem:[#allocation5 + $0x130] sm:$0xff]  ;;  %v764_v11 = vpack.c.bf16 %v307_v4, %v303_v3  ;;  %v306_v12 = vld [vmem:[#allocation5 + $0x1e0] sm:$0xff]  ;;  %v289_v13 = vld [vmem:[#allocation5 + $0x158] sm:$0xff] }
  0x7f   : > { %753 = vmatprep.subr.bf16.mxu0 %v752_v37  ;;  %v293_v14 = vld [vmem:[#allocation5 + $0x178] sm:$0xff]  ;;  %v786_v15 = vpack.c.bf16 %v284_v10, %v280_v9  ;;  %v766_v16 = vpack.c.bf16 %v306_v12, %v302_v7  ;;  %v288_v18 = vld [vmem:[#allocation5 + $0x150] sm:$0xff]  ;;  %v482_v34 = vld [vmem:[#allocation7 + $0x80] sm:$0xff] }
  0x80   : > { %783 = vmatpush1.bf16.msra.mxu1 %v782_v5  ;;  %v788_v17 = vpack.c.bf16 %v293_v14, %v289_v13  ;;  %v292_v19 = vld [vmem:[#allocation5 + $0x170] sm:$0xff]  ;;  %v297_v20 = vld [vmem:[#allocation5 + $0x198] sm:$0xff]  ;;  %v483_v35 = vld [vmem:[#allocation7 + $0x88] sm:$0xff] }
  0x81   : > { %785 = vmatprep.subr.bf16.mxu1 %v784_v8  ;;  %v301_v21 = vld [vmem:[#allocation5 + $0x1b8] sm:$0xff]  ;;  %v790_v22 = vpack.c.bf16 %v292_v19, %v288_v18  ;;  %v296_v25 = vld [vmem:[#allocation5 + $0x190] sm:$0xff]  ;;  %v800_v36 = vpack.c.bf16 %v483_v35, %v482_v34  ;;  %v466_v37 = vld [vmem:[#allocation7] sm:$0xff] }
  0x82   : > { %755 = vmatpush1.bf16.msra.mxu0 %v754_v46  ;;  %v245_v23 = vld [vmem:[%s1322_s27] sm:$0xff]  ;;  %v792_v24 = vpack.c.bf16 %v301_v21, %v297_v20  ;;  %v467_v38 = vld [vmem:[#allocation7 + $0x8] sm:$0xff]  ;;  %v486_v46 = vld [vmem:[#allocation7 + $0xa0] sm:$0xff] }
  0x83   : > { %757 = vmatprep.subr.bf16.mxu0 %v756_v51  ;;  %v300_v26 = vld [vmem:[#allocation5 + $0x1b0] sm:$0xff]  ;;  %v305_v27 = vld [vmem:[#allocation5 + $0x1d8] sm:$0xff]  ;;  %v802_v39 = vpack.c.bf16 %v467_v38, %v466_v37  ;;  %v487_v47 = vld [vmem:[#allocation7 + $0xa8] sm:$0xff] }
  0x84   : > { %787 = vmatpush1.bf16.msra.mxu1 %v786_v15  ;;  %v309_v28 = vld [vmem:[#allocation5 + $0x1f8] sm:$0xff]  ;;  %v794_v29 = vpack.c.bf16 %v300_v26, %v296_v25  ;;  %v304_v31 = vld [vmem:[#allocation5 + $0x1d0] sm:$0xff]  ;;  %v808_v48 = vpack.c.bf16 %v487_v47, %v486_v46  ;;  %v470_v49 = vld [vmem:[#allocation7 + $0x20] sm:$0xff] }
  0x85   : > { %789 = vmatprep.subr.bf16.mxu1 %v788_v17  ;;  %v796_v30 = vpack.c.bf16 %v309_v28, %v305_v27  ;;  %v308_v32 = vld [vmem:[#allocation5 + $0x1f0] sm:$0xff]  ;;  %v485_v41 = vld [vmem:[#allocation7 + $0x98] sm:$0xff]  ;;  %v471_v50 = vld [vmem:[#allocation7 + $0x28] sm:$0xff] }
  0x86   : > { %759 = vmatpush1.bf16.msra.mxu0 %v758_v58  ;;  %v798_v33 = vpack.c.bf16 %v308_v32, %v304_v31  ;;  %v484_v40 = vld [vmem:[#allocation7 + $0x90] sm:$0xff]  ;;  %v469_v44 = vld [vmem:[#allocation7 + $0x18] sm:$0xff]  ;;  %v810_v51 = vpack.c.bf16 %v471_v50, %v470_v49  ;;  %v490_v58 = vld [vmem:[#allocation7 + $0xc0] sm:$0xff] }
  0x87   : > { %761 = vmatprep.subr.bf16.mxu0 %v760_v63  ;;  %v804_v42 = vpack.c.bf16 %v485_v41, %v484_v40  ;;  %v468_v43 = vld [vmem:[#allocation7 + $0x10] sm:$0xff]  ;;  %v489_v53 = vld [vmem:[#allocation7 + $0xb8] sm:$0xff]  ;;  %v491_v59 = vld [vmem:[#allocation7 + $0xc8] sm:$0xff] }
  0x88   : > { %791 = vmatpush1.bf16.msra.mxu1 %v790_v22  ;;  %v806_v45 = vpack.c.bf16 %v469_v44, %v468_v43  ;;  %v488_v52 = vld [vmem:[#allocation7 + $0xb0] sm:$0xff]  ;;  %v473_v56 = vld [vmem:[#allocation7 + $0x38] sm:$0xff]  ;;  %v816_v60 = vpack.c.bf16 %v491_v59, %v490_v58  ;;  %v474_v61 = vld [vmem:[#allocation7 + $0x40] sm:$0xff] }
  0x89   : > { %793 = vmatprep.subr.bf16.mxu1 %v792_v24  ;;  %v812_v54 = vpack.c.bf16 %v489_v53, %v488_v52  ;;  %v472_v55 = vld [vmem:[#allocation7 + $0x30] sm:$0xff]  ;;  %v475_v62 = vld [vmem:[#allocation7 + $0x48] sm:$0xff]  ;;  %v493_v1 = vld [vmem:[#allocation7 + $0xd8] sm:$0xff] }
  0x8a   : > { %763 = vmatpush1.bf16.msra.mxu0 %v762_v6  ;;  %v814_v57 = vpack.c.bf16 %v473_v56, %v472_v55  ;;  %v818_v63 = vpack.c.bf16 %v475_v62, %v474_v61  ;;  %v492_v0 = vld [vmem:[#allocation7 + $0xd0] sm:$0xff]  ;;  %v477_v4 = vld [vmem:[#allocation7 + $0x58] sm:$0xff]  ;;  %v494_v6 = vld [vmem:[#allocation7 + $0xe0] sm:$0xff] }
  0x8b   : > { %765 = vmatprep.subr.bf16.mxu0 %v764_v11  ;;  %v820_v2 = vpack.c.bf16 %v493_v1, %v492_v0  ;;  %v476_v3 = vld [vmem:[#allocation7 + $0x50] sm:$0xff]  ;;  %v495_v7 = vld [vmem:[#allocation7 + $0xe8] sm:$0xff]  ;;  %v478_v9 = vld [vmem:[#allocation7 + $0x60] sm:$0xff] }
  0x8c   : > { %795 = vmatpush1.bf16.msra.mxu1 %v794_v29  ;;  %v822_v5 = vpack.c.bf16 %v477_v4, %v476_v3  ;;  %v824_v8 = vpack.c.bf16 %v495_v7, %v494_v6  ;;  %v479_v10 = vld [vmem:[#allocation7 + $0x68] sm:$0xff]  ;;  %v496_v12 = vld [vmem:[#allocation7 + $0xf0] sm:$0xff]  ;;  %v497_v13 = vld [vmem:[#allocation7 + $0xf8] sm:$0xff] }
  0x8d   : > { %797 = vmatprep.subr.bf16.mxu1 %v796_v30  ;;  %v826_v11 = vpack.c.bf16 %v479_v10, %v478_v9  ;;  %v828_v14 = vpack.c.bf16 %v497_v13, %v496_v12  ;;  %v480_v15 = vld [vmem:[#allocation7 + $0x70] sm:$0xff] }
  0x8e   : > { %767 = vmatpush1.bf16.msra.mxu0 %v766_v16  ;;  %v481_v16 = vld [vmem:[#allocation7 + $0x78] sm:$0xff] }
  0x8f   : > { %801 = vmatprep.subr.bf16.mxu0 %v800_v36  ;;  %v830_v17 = vpack.c.bf16 %v481_v16, %v480_v15 }
  0x90   : > { %799 = vmatpush1.bf16.msra.mxu1 %v798_v33 }
  0x91   : > { %375 = vmatmul.mubr.f32.vlgmr.msra.gmra.mrb[0].mxu0 %v245_v23 }
  0x92   : > { %803 = vmatpush3.bf16.msra.mxu0 %v802_v39 }
  0x93   : > { %446 = vmatmul.mubr.f32.vlgmr.msra.gmra.mrb[0].mxu1 %v245_v23  ;;  %805 = vmatprep.subr.bf16.mxu0 %v804_v42 }
  0x96   : > { %807 = vmatpush3.bf16.msra.mxu0 %v806_v45 }
  0x97   : > { %809 = vmatprep.subr.bf16.mxu0 %v808_v48 }
  0x9a   : > { %811 = vmatpush3.bf16.msra.mxu0 %v810_v51 }
  0x9b   : > { %813 = vmatprep.subr.bf16.mxu0 %v812_v54 }
  0x9e   : > { %815 = vmatpush3.bf16.msra.mxu0 %v814_v57 }
  0x9f   : > { %817 = vmatprep.subr.bf16.mxu0 %v816_v60 }
  0xa2   : > { %819 = vmatpush3.bf16.msra.mxu0 %v818_v63 }
  0xa3   : > { %821 = vmatprep.subr.bf16.mxu0 %v820_v2 }
  0xa6   : > { %823 = vmatpush3.bf16.msra.mxu0 %v822_v5 }
  0xa7   : > { %825 = vmatprep.subr.bf16.mxu0 %v824_v8 }
  0xaa   : > { %827 = vmatpush3.bf16.msra.mxu0 %v826_v11 }
  0xab   : > { %829 = vmatprep.subr.bf16.mxu0 %v828_v14 }
  0xae   : > { %831 = vmatpush3.bf16.msra.mxu0 %v830_v17 }
 0x164   : > { %v376_v18 = vpop.f32.mrb[0].mxu0 }
 0x165   : > { %v452_v19 = vsub.f32 0.0, %v376_v18  ;;  %v378_v20 = vpop.f32.mrb[1].mxu0 }
 0x166   : > { %v453_v21 = vsub.f32 0.0, %v378_v20  ;;  %v447_v24 = vpop.f32.mrb[0].mxu1 }
 0x167   : > { %v454_v22 = vmul.f32 1.442695, %v452_v19  ;;  %v449_v25 = vpop.f32.mrb[1].mxu1 }
 0x168   : > { %v456_v23 = vmul.f32 1.442695, %v453_v21 }
 0x169   : > { %920 = vpow2.f32 %v454_v22 }
 0x16a   : > { %922 = vpow2.f32 %v456_v23 }
 0x173   : > { %v921_v26 = vpop.eup %920 }
 0x174   : > { %v923_v27 = vpop.eup %922  ;;  %v458_v28 = vadd.f32 1.0, %v921_v26 }
 0x175   : > { %v459_v29 = vadd.f32 1.0, %v923_v27 }
 0x176   : > { %924 = vrcp.f32 %v458_v28 }
 0x177   : > { %926 = vrcp.f32 %v459_v29 }
 0x180   : > { %v925_v30 = vpop.eup %924 }
 0x181   : > { %v927_v31 = vpop.eup %926  ;;  %v462_v32 = vmul.f32 %v925_v30, %v376_v18 }
 0x182   : > { %v463_v33 = vmul.f32 %v927_v31, %v378_v20 }
 0x183   : > { %v464_v34 = vmul.f32 %v462_v32, %v447_v24 }
 0x184   : > { %v465_v35 = vmul.f32 %v463_v33, %v449_v25 }
 0x186   : > { %562 = vmatprep.mubr.f32.mxu0 %v465_v35 }
 0x187   : > { %563 = vmatmul.mubr.f32.vlgmr.msra.gmra.mrb[2].mxu0 %v464_v34 }
 0x25a   : > { %v733_v36 = vpop.f32.mrb[2].mxu0 }
 0x25b   : > { %v734_v37 = vpop.f32.mrb[3].mxu0 }
 0x25c   : > { %v735_v38 = vadd.f32 %v734_v37, %v733_v36 }
 0x25e   : > { %568 = vst [vmem:[%s242_s22] sm:$0xff] %v735_v38 }
 0x25f   : > { %1027 = shalt.err (!%p1024_p11)
}
 0x260   : > { %s1028_s6 = scalar_lea.hbm %s1339_s9, 128  ;;  %s1032_s11 = scalar_lea.hbm %s1391_s3, 256 }
 0x261   : > { %p1029_p0 = scmp.ne.s32.totalorder %s1339_s9, %s1028_s6  ;;  %p1033_p6 = scmp.lt.u32.totalorder %s1339_s9, %s1391_s3 }
 0x262   : > { %p1034_p7 = scmp.lt.u32.totalorder %s1032_s11, %s1028_s6  ;;  %p1036_p8 = scmp.lt.u32.totalorder %s1028_s6, %s1339_s9 }
 0x263   : > { %p1030_p4 = pnand %p1029_p0, %p1406_p12 }
 0x264   : > { %p1035_p2 = por %p1034_p7, %p1033_p6 }
 0x265   : > { %p1031_p13 = pneg %p1030_p4 }
 0x266   : > { %p1037_p1 = por %p1036_p8, %p1035_p2 }
 0x268   : > { %p1038_p10 = pnand %p1037_p1, %p1031_p13 }
 0x26a   : > { %1041 = shalt.err (!%p1038_p10)
}
 0x26b   : > { %842 = dma.vmem_to_hbm [thread:$0]  (%p1406_p12), %s1341_s24, 128, %s1339_s9, %s570_s10  }
 0x26c PF: > { %s595_s27 = sand.u32 1, %s1080_s12   ;;  %p1407_p3 = scmp.ne.s32.totalorder %s1399_s23, 0 }
 0x26d   : > { %p1408_p5 = scmp.ge.s32.totalorder %s1100_s17, 2  ;;  %s596_s20 = scalar_lea.sflag [#allocation4], %s595_s27 }
 0x26f   : > { %p856_p9 = pnand %p1408_p5, %p1407_p3 }
 0x271   : > { %1075 = dma.done.wait (!%p856_p9), %s596_s20, 128  }
 0x272   : > { %1077 = vsyncadd (!%p856_p9), %s596_s20, 4294967168  ;;  %s20_s17 = sadd.s32 1, %s1100_s17   ;;  %s1409_s12 = smov %s1084_s13 }
 0x273   : > { %p17_p11 = scmp.ge.s32.totalorder %s20_s17, 4   ;;  %s1410_s13 = smov %s1088_s14 }
 0x274   : > { %s1411_s14 = smov %s1273_s5  ;;  %s1412_s15 = smov %s1096_s16 }
 0x275   : > { %s1413_s16 = smov %s1415_s19  ;;  %19 = sbr.rel (!%p17_p11) target bundleno = 7 (0x7), region = 87 }
 0x27c   :  { %601 = vsyncpa [#allocation3], 1 }
 0x27d   :  { %603 = vsyncpa [#allocation3 + $0x1], 1 }
 0x27e   :  { %604 = vsyncpa [#allocation6], 1 }
 0x27f   :  { %605 = vsyncpa [#allocation4], 1 }
 0x280   :  { %607 = vsyncpa [#allocation4 + $0x1], 1 }

</bundles_post_ra>
